<compile_context>
chip_gen: v7x
topology: tpu7x:2x2x1
jax: 0.10.0
libtpu: 0.0.40
codegen_flags: <defaults>
</compile_context>

<pallas_src>
import jax
import jax.numpy as jnp
from jax.experimental import pallas as pl
from jax.experimental.pallas import tpu as pltpu


def _attention_kernel(x_ref, mask_ref, wq_ref, bq_ref, wk_ref, bk_ref,
                      wv_ref, bv_ref, out_ref, q_s, kT_s, v_s):
    """One grid step = (batch block b, query tile qi).

    x_ref:    (BB, L, E) f32   full sequence for this batch block (resident
                               across query tiles; K/V projected at qi == 0)
    mask_ref: (BB, TQ, L) bf16 additive 0/1 mask rows (broadcast over heads)
    w*_ref:   (E, H) bf16      lane-dense projection weights
    b*_ref:   (1, H) f32       biases
    out_ref:  (BB, TQ, H) f32
    q_s:      (BB, n_head, TQ, d) bf16 scratch
    kT_s:     (BB, n_head, d,  L) bf16 scratch (K pre-transposed, lane-dense L)
    v_s:      (BB, n_head, L,  d) bf16 scratch
    """
    BB, L, E = x_ref.shape
    n_head, TQ, d = q_s.shape[1], q_s.shape[2], q_s.shape[3]
    H = n_head * d
    G = BB * n_head
    qi = pl.program_id(1)

    # --- K / V projection: once per batch block, two lane-dense N=H matmuls. -
    @pl.when(qi == 0)
    def _project_kv():
        x_flat = x_ref[...].reshape(BB * L, E).astype(jnp.bfloat16)
        k_f = jnp.dot(x_flat, wk_ref[...],
                      preferred_element_type=jnp.float32) + bk_ref[...]
        v_f = jnp.dot(x_flat, wv_ref[...],
                      preferred_element_type=jnp.float32) + bv_ref[...]
        kT_full = k_f.T                                   # (H, BB*L): one f32 transpose
        v3 = v_f.reshape(BB, L, H)
        for b in range(BB):                               # static unroll: data movement only
            for h in range(n_head):
                kT_s[b, h] = kT_full[h * d:(h + 1) * d,
                                     b * L:(b + 1) * L].astype(jnp.bfloat16)
                v_s[b, h] = v3[b, :, h * d:(h + 1) * d].astype(jnp.bfloat16)

    # --- Q projection for this query tile (rows sliced from resident block). -
    if TQ == L:
        xq = x_ref[...]
    else:
        q_start = pl.multiple_of(qi * TQ, TQ)
        xq = x_ref[:, pl.ds(q_start, TQ), :]
    xq = xq.reshape(BB * TQ, E).astype(jnp.bfloat16)
    q_f = jnp.dot(xq, wq_ref[...],
                  preferred_element_type=jnp.float32) + bq_ref[...]
    q3 = q_f.reshape(BB, TQ, H)
    for b in range(BB):
        for h in range(n_head):
            q_s[b, h] = q3[b, :, h * d:(h + 1) * d].astype(jnp.bfloat16)

    # --- Scores for all (batch, head) pairs: batched natural-form MXU dot. ---
    s = jnp.einsum('gqd,gdk->gqk',
                   q_s[...].reshape(G, TQ, d),
                   kT_s[...].reshape(G, d, L),
                   preferred_element_type=jnp.float32)     # (G, TQ, L) f32
    neg = mask_ref[...].astype(jnp.float32) * (-100000.0)  # (BB, TQ, L)
    s = s.reshape(BB, n_head, TQ, L) + neg[:, None, :, :]

    # --- f32 softmax; normalization deferred past the PV matmul. -------------
    s_max = jnp.max(s, axis=-1, keepdims=True)
    p = jnp.exp(s - s_max)
    denom = jnp.sum(p, axis=-1, keepdims=True)             # (BB, n_head, TQ, 1)

    ctx = jnp.einsum('gqk,gkd->gqd',
                     p.reshape(G, TQ, L).astype(jnp.bfloat16),
                     v_s[...].reshape(G, L, d),
                     preferred_element_type=jnp.float32)   # (G, TQ, d)
    ctx = ctx.reshape(BB, n_head, TQ, d) * pl.reciprocal(denom, approx=True)

    # --- Merge heads 'b h q d -> b q (h d)'; ONE lane-dense output store. ----
    # (n_head lane-offset copies; kept as a single HBM store per the review.)
    merged = jnp.concatenate([ctx[:, h] for h in range(n_head)], axis=-1)
    out_ref[...] = merged.astype(out_ref.dtype)


def _round_up(x, m):
    return (x + m - 1) // m * m


def _padded_bytes(shape, dtype):
    """VMEM footprint including (sublane, 128)-lane tile padding."""
    itemsize = jnp.dtype(dtype).itemsize
    sublane = 32 // itemsize                 # 8 for f32, 16 for bf16
    dims = [int(s) for s in shape]
    if len(dims) < 2:
        dims = [1] * (2 - len(dims)) + dims
    lead = 1
    for s in dims[:-2]:
        lead *= s
    return lead * _round_up(dims[-2], sublane) * _round_up(dims[-1], 128) * itemsize


def _vmem_estimate(BB, TQ, L, E, H, n_head, d):
    bf16, f32 = jnp.bfloat16, jnp.float32
    G = BB * n_head
    est = 0
    # Double-buffered pipeline blocks (inputs + output).
    est += 2 * _padded_bytes((BB, L, E), f32)          # embedding block
    est += 2 * _padded_bytes((BB, TQ, L), bf16)        # mask block
    est += 2 * 3 * _padded_bytes((E, H), bf16)         # Wq / Wk / Wv
    est += 2 * 3 * _padded_bytes((1, H), f32)          # biases
    est += 2 * _padded_bytes((BB, TQ, H), f32)         # output block
    # Persistent scratch (d-minor planes pad to 128 lanes -> counted exactly).
    est += BB * n_head * _padded_bytes((TQ, d), bf16)  # Q (head-major)
    est += BB * n_head * _padded_bytes((d, L), bf16)   # K^T cache
    est += BB * n_head * _padded_bytes((L, d), bf16)   # V cache
    # Live temporaries: f32 scores + probs co-live, bf16 probs for the PV dot,
    # plus projection / context intermediates.
    est += 2 * G * _padded_bytes((TQ, L), f32)
    est += G * _padded_bytes((TQ, L), bf16)
    est += 2 * _padded_bytes((BB * L, H), f32)         # K, V projection results
    est += _padded_bytes((BB * TQ, H), f32)            # Q projection result
    est += G * _padded_bytes((TQ, d), f32)             # context accumulator
    return est


def _pick_tiles(B, L, E, H, n_head, d, budget):
    """Pick (BB batch elements per step, TQ query-tile rows) within `budget`."""
    # Prefer whole-sequence tiles (n_qt = 1) and fat steps, while keeping >= 2
    # grid steps along the parallel batch axis so both v7x TensorCores get work.
    bb_cands = [bb for bb in range(min(B, 8), 0, -1) if B % bb == 0]
    for bb in bb_cands:
        if B >= 2 and B // bb < 2:
            continue
        if _vmem_estimate(bb, L, L, E, H, n_head, d) <= budget:
            return bb, L
    # Whole-L tiles don't fit: fall back to BB = 1 and a query tile that does.
    for tq in (512, 256, 128, 64, 32, 16, 8):
        if tq < L and L % tq == 0 and _vmem_estimate(1, tq, L, E, H, n_head, d) <= budget:
            return 1, tq
    # TODO(synk): flash-style KV-tiled online softmax for very long sequences.
    return 1, L


def attention_forward(embedding, mask, params, *, n_head):
    """embedding: (B, L, E) f32; mask: (B, 1, L, L) 0/1 -> (B, L, H) f32."""
    B, L, E = embedding.shape
    wq, bq, wk, bk, wv, bv = params
    H = wq.shape[1]
    assert H % n_head == 0
    d = H // n_head

    # VMEM budget derived from the chip; fall back to the most conservative
    # per-core figure (v7x: 64 MiB) if the query is unavailable.
    try:
        vmem_cap = int(pltpu.get_tpu_info().vmem_capacity_bytes)
    except Exception:
        vmem_cap = 64 * 2 ** 20
    budget = int(0.70 * vmem_cap)

    BB, TQ = _pick_tiles(B, L, E, H, n_head, d, budget)
    assert B % BB == 0 and L % TQ == 0
    n_bb, n_qt = B // BB, L // TQ

    est = _vmem_estimate(BB, TQ, L, E, H, n_head, d)
    vmem_limit = int(min(0.85 * vmem_cap, max(32 * 2 ** 20, 2 * est)))

    # Lane-dense bf16 weights; f32 biases broadcast as (1, H).
    wq_b, wk_b, wv_b = (w.astype(jnp.bfloat16) for w in (wq, wk, wv))
    bq_b, bk_b, bv_b = (b.reshape(1, H).astype(jnp.float32) for b in (bq, bk, bv))

    # Squeeze the broadcast head dim; 0/1 padding masks are exact in bf16
    # (intentional precision choice: halves the dominant per-step DMA stream).
    mask2d = mask.reshape(B, L, L).astype(jnp.bfloat16)

    kernel = pl.pallas_call(
        _attention_kernel,
        out_shape=jax.ShapeDtypeStruct((B, L, H), embedding.dtype),
        grid=(n_bb, n_qt),
        in_specs=[
            pl.BlockSpec((BB, L, E), lambda b, q: (b, 0, 0)),   # embedding (full seq)
            pl.BlockSpec((BB, TQ, L), lambda b, q: (b, q, 0)),  # mask rows
            pl.BlockSpec((E, H), lambda b, q: (0, 0)),          # Wq
            pl.BlockSpec((1, H), lambda b, q: (0, 0)),          # bq
            pl.BlockSpec((E, H), lambda b, q: (0, 0)),          # Wk
            pl.BlockSpec((1, H), lambda b, q: (0, 0)),          # bk
            pl.BlockSpec((E, H), lambda b, q: (0, 0)),          # Wv
            pl.BlockSpec((1, H), lambda b, q: (0, 0)),          # bv
        ],
        out_specs=pl.BlockSpec((BB, TQ, H), lambda b, q: (b, q, 0)),
        scratch_shapes=[
            pltpu.VMEM((BB, n_head, TQ, d), jnp.bfloat16),      # Q (head-major)
            pltpu.VMEM((BB, n_head, d, L), jnp.bfloat16),       # K^T cache
            pltpu.VMEM((BB, n_head, L, d), jnp.bfloat16),       # V cache
        ],
        compiler_params=pltpu.CompilerParams(
            dimension_semantics=("parallel", "arbitrary"),
            vmem_limit_bytes=vmem_limit),
    )
    return kernel(embedding, mask2d, wq_b, bq_b, wk_b, bk_b, wv_b, bv_b)


def attention_reference(embedding, mask, params, *, n_head):
    """Plain-JAX mirror of the PyTorch forward, for verification."""
    wq, bq, wk, bk, wv, bv = params
    B, L, E = embedding.shape
    H = wq.shape[1]
    d = H // n_head

    def split(t):  # 'b l (h d) -> b h l d'
        return t.reshape(B, L, n_head, d).transpose(0, 2, 1, 3)

    q = split(embedding @ wq + bq)
    k = split(embedding @ wk + bk)
    v = split(embedding @ wv + bv)
    scores = jnp.einsum("bhld,bhmd->bhlm", q, k)
    scores = scores + mask * (-100000.0)
    probs = jax.nn.softmax(scores, axis=-1)
    ctx = jnp.einsum("bhlm,bhmd->bhld", probs, v)
    return ctx.transpose(0, 2, 1, 3).reshape(B, L, H)  # 'b h l d -> b l (h d)'


if __name__ == "__main__":
    # Small deterministic shapes consistent with the module:
    # embedding_dim = hidden_dim = 32, n_head = 4 (head_dim = 8), B = 2, L = 8.
    B, L, E = 2, 8, 32
    H, n_head = 32, 4

    key = jax.random.PRNGKey(0)
    k_x, k_m, k_wq, k_bq, k_wk, k_bk, k_wv, k_bv = jax.random.split(key, 8)

    embedding = jax.random.normal(k_x, (B, L, E), dtype=jnp.float32)
    # 0/1 padding-style mask, broadcast over heads like the PyTorch code.
    mask = (jax.random.uniform(k_m, (B, 1, L, L)) > 0.8).astype(jnp.float32)

    def linear_init(kw, kb, fan_in, fan_out):
        bound = 1.0 / (fan_in ** 0.5)
        w = jax.random.uniform(kw, (fan_in, fan_out), jnp.float32, -bound, bound)
        b = jax.random.uniform(kb, (fan_out,), jnp.float32, -bound, bound)
        return w, b

    wq, bq = linear_init(k_wq, k_bq, E, H)
    wk, bk = linear_init(k_wk, k_bk, E, H)
    wv, bv = linear_init(k_wv, k_bv, E, H)
    params = (wq, bq, wk, bk, wv, bv)

    out = attention_forward(embedding, mask, params, n_head=n_head)
    out = jax.block_until_ready(out)

    ref = attention_reference(embedding, mask, params, n_head=n_head)
    assert out.shape == (B, L, H)
    # bf16 MXU operands + bf16 probabilities + approx reciprocal vs f32
    # reference -> intentionally looser tolerance.
    assert jnp.allclose(out, ref, atol=3e-2, rtol=3e-2)

    print("KERNEL_OK")
</pallas_src>

<mosaic_0001>
module attributes {stable_mosaic.version = 11 : i64} {
  func.func @_attention_kernel(%arg0: i32, %arg1: i32, %arg2: memref<1x8x32xf32, #tpu.memory_space<vmem>>, %arg3: memref<1x8x8xbf16, #tpu.memory_space<vmem>>, %arg4: memref<32x32xbf16, #tpu.memory_space<vmem>>, %arg5: memref<1x32xf32, #tpu.memory_space<vmem>>, %arg6: memref<32x32xbf16, #tpu.memory_space<vmem>>, %arg7: memref<1x32xf32, #tpu.memory_space<vmem>>, %arg8: memref<32x32xbf16, #tpu.memory_space<vmem>>, %arg9: memref<1x32xf32, #tpu.memory_space<vmem>>, %arg10: memref<1x8x32xf32, #tpu.memory_space<vmem>>, %arg11: memref<1x4x8x8xbf16, #tpu.memory_space<vmem>>, %arg12: memref<1x4x8x8xbf16, #tpu.memory_space<vmem>>, %arg13: memref<1x4x8x8xbf16, #tpu.memory_space<vmem>>) attributes {dimension_semantics = [#tpu.dimension_semantics<parallel>, #tpu.dimension_semantics<arbitrary>], iteration_bounds = array<i64: 2, 1>, scalar_prefetch = 0 : i64, scratch_operands = 3 : i64, tpu.core_type = #tpu.core_type<tc>, window_params = [{transform_indices = @transform_0, window_bounds = array<i64: 1, 8, 32>}, {transform_indices = @transform_1, window_bounds = array<i64: 1, 8, 8>}, {pipeline_mode = #tpu.pipeline_mode<synchronous>, transform_indices = @transform_2, window_bounds = array<i64: 32, 32>}, {pipeline_mode = #tpu.pipeline_mode<synchronous>, transform_indices = @transform_3, window_bounds = array<i64: 1, 32>}, {pipeline_mode = #tpu.pipeline_mode<synchronous>, transform_indices = @transform_4, window_bounds = array<i64: 32, 32>}, {pipeline_mode = #tpu.pipeline_mode<synchronous>, transform_indices = @transform_5, window_bounds = array<i64: 1, 32>}, {pipeline_mode = #tpu.pipeline_mode<synchronous>, transform_indices = @transform_6, window_bounds = array<i64: 32, 32>}, {pipeline_mode = #tpu.pipeline_mode<synchronous>, transform_indices = @transform_7, window_bounds = array<i64: 1, 32>}, {transform_indices = @transform_8, window_bounds = array<i64: 1, 8, 32>}]} {
    %c0_i32 = arith.constant 0 : i32
    %0 = arith.cmpi eq, %arg1, %c0_i32 : i32
    %1 = arith.extui %0 : i1 to i32
    %c0_i32_0 = arith.constant 0 : i32
    %2 = arith.cmpi ne, %1, %c0_i32_0 : i32
    scf.if %2 {
      %c0_43 = arith.constant 0 : index
      %c0_44 = arith.constant 0 : index
      %c0_45 = arith.constant 0 : index
      %75 = vector.load %arg2[%c0_43, %c0_44, %c0_45] : memref<1x8x32xf32, #tpu.memory_space<vmem>>, vector<1x8x32xf32>
      %76 = vector.shape_cast %75 : vector<1x8x32xf32> to vector<8x32xf32>
      %77 = arith.truncf %76 : vector<8x32xf32> to vector<8x32xbf16>
      %c0_46 = arith.constant 0 : index
      %c0_47 = arith.constant 0 : index
      %78 = vector.load %arg6[%c0_46, %c0_47] : memref<32x32xbf16, #tpu.memory_space<vmem>>, vector<32x32xbf16>
      %cst_48 = arith.constant dense<0.000000e+00> : vector<8x32xf32>
      %79 = tpu.matmul %77, %78, %cst_48 {dimension_numbers = #tpu.dot_dimension_numbers<[1], [0], [0], [1], [0, 0, 1, 1], [], []>} : vector<8x32xbf16>, vector<32x32xbf16>, vector<8x32xf32> -> vector<8x32xf32>
      %c0_49 = arith.constant 0 : index
      %c0_50 = arith.constant 0 : index
      %80 = vector.load %arg7[%c0_49, %c0_50] : memref<1x32xf32, #tpu.memory_space<vmem>>, vector<1x32xf32>
      %81 = vector.broadcast %80 : vector<1x32xf32> to vector<8x32xf32>
      %82 = arith.addf %79, %81 : vector<8x32xf32>
      %c0_51 = arith.constant 0 : index
      %c0_52 = arith.constant 0 : index
      %83 = vector.load %arg8[%c0_51, %c0_52] : memref<32x32xbf16, #tpu.memory_space<vmem>>, vector<32x32xbf16>
      %cst_53 = arith.constant dense<0.000000e+00> : vector<8x32xf32>
      %84 = tpu.matmul %77, %83, %cst_53 {dimension_numbers = #tpu.dot_dimension_numbers<[1], [0], [0], [1], [0, 0, 1, 1], [], []>} : vector<8x32xbf16>, vector<32x32xbf16>, vector<8x32xf32> -> vector<8x32xf32>
      %c0_54 = arith.constant 0 : index
      %c0_55 = arith.constant 0 : index
      %85 = vector.load %arg9[%c0_54, %c0_55] : memref<1x32xf32, #tpu.memory_space<vmem>>, vector<1x32xf32>
      %86 = vector.broadcast %85 : vector<1x32xf32> to vector<8x32xf32>
      %87 = arith.addf %84, %86 : vector<8x32xf32>
      %88 = tpu.transpose %82, [1, 0] : vector<8x32xf32> -> vector<32x8xf32>
      %89 = vector.shape_cast %87 : vector<8x32xf32> to vector<1x8x32xf32>
      %90 = vector.extract_strided_slice %88 {offsets = [0, 0], sizes = [8, 8], strides = [1, 1]} : vector<32x8xf32> to vector<8x8xf32>
      %91 = arith.truncf %90 : vector<8x8xf32> to vector<8x8xbf16>
      %c0_56 = arith.constant 0 : index
      %c0_57 = arith.constant 0 : index
      %c0_58 = arith.constant 0 : index
      %c0_59 = arith.constant 0 : index
      %92 = vector.load %arg12[%c0_56, %c0_57, %c0_58, %c0_59] : memref<1x4x8x8xbf16, #tpu.memory_space<vmem>>, vector<1x1x8x8xbf16>
      %93 = vector.shape_cast %92 : vector<1x1x8x8xbf16> to vector<8x8xbf16>
      %94 = vector.shape_cast %91 : vector<8x8xbf16> to vector<1x1x8x8xbf16>
      tpu.vector_store %arg12[%c0_56, %c0_57, %c0_58, %c0_59], %94 {strides = array<i32>} : memref<1x4x8x8xbf16, #tpu.memory_space<vmem>>, vector<1x1x8x8xbf16>,
      %95 = vector.extract_strided_slice %89 {offsets = [0, 0, 0], sizes = [1, 8, 8], strides = [1, 1, 1]} : vector<1x8x32xf32> to vector<1x8x8xf32>
      %96 = vector.shape_cast %95 : vector<1x8x8xf32> to vector<8x8xf32>
      %97 = arith.truncf %96 : vector<8x8xf32> to vector<8x8xbf16>
      %c0_60 = arith.constant 0 : index
      %c0_61 = arith.constant 0 : index
      %c0_62 = arith.constant 0 : index
      %c0_63 = arith.constant 0 : index
      %98 = vector.load %arg13[%c0_60, %c0_61, %c0_62, %c0_63] : memref<1x4x8x8xbf16, #tpu.memory_space<vmem>>, vector<1x1x8x8xbf16>
      %99 = vector.shape_cast %98 : vector<1x1x8x8xbf16> to vector<8x8xbf16>
      %100 = vector.shape_cast %97 : vector<8x8xbf16> to vector<1x1x8x8xbf16>
      tpu.vector_store %arg13[%c0_60, %c0_61, %c0_62, %c0_63], %100 {strides = array<i32>} : memref<1x4x8x8xbf16, #tpu.memory_space<vmem>>, vector<1x1x8x8xbf16>,
      %101 = vector.extract_strided_slice %88 {offsets = [8, 0], sizes = [8, 8], strides = [1, 1]} : vector<32x8xf32> to vector<8x8xf32>
      %102 = arith.truncf %101 : vector<8x8xf32> to vector<8x8xbf16>
      %c0_64 = arith.constant 0 : index
      %c1_65 = arith.constant 1 : index
      %c0_66 = arith.constant 0 : index
      %c0_67 = arith.constant 0 : index
      %103 = vector.load %arg12[%c0_64, %c1_65, %c0_66, %c0_67] : memref<1x4x8x8xbf16, #tpu.memory_space<vmem>>, vector<1x1x8x8xbf16>
      %104 = vector.shape_cast %103 : vector<1x1x8x8xbf16> to vector<8x8xbf16>
      %105 = vector.shape_cast %102 : vector<8x8xbf16> to vector<1x1x8x8xbf16>
      tpu.vector_store %arg12[%c0_64, %c1_65, %c0_66, %c0_67], %105 {strides = array<i32>} : memref<1x4x8x8xbf16, #tpu.memory_space<vmem>>, vector<1x1x8x8xbf16>,
      %106 = vector.extract_strided_slice %89 {offsets = [0, 0, 8], sizes = [1, 8, 8], strides = [1, 1, 1]} : vector<1x8x32xf32> to vector<1x8x8xf32>
      %107 = vector.shape_cast %106 : vector<1x8x8xf32> to vector<8x8xf32>
      %108 = arith.truncf %107 : vector<8x8xf32> to vector<8x8xbf16>
      %c0_68 = arith.constant 0 : index
      %c1_69 = arith.constant 1 : index
      %c0_70 = arith.constant 0 : index
      %c0_71 = arith.constant 0 : index
      %109 = vector.load %arg13[%c0_68, %c1_69, %c0_70, %c0_71] : memref<1x4x8x8xbf16, #tpu.memory_space<vmem>>, vector<1x1x8x8xbf16>
      %110 = vector.shape_cast %109 : vector<1x1x8x8xbf16> to vector<8x8xbf16>
      %111 = vector.shape_cast %108 : vector<8x8xbf16> to vector<1x1x8x8xbf16>
      tpu.vector_store %arg13[%c0_68, %c1_69, %c0_70, %c0_71], %111 {strides = array<i32>} : memref<1x4x8x8xbf16, #tpu.memory_space<vmem>>, vector<1x1x8x8xbf16>,
      %112 = vector.extract_strided_slice %88 {offsets = [16, 0], sizes = [8, 8], strides = [1, 1]} : vector<32x8xf32> to vector<8x8xf32>
      %113 = arith.truncf %112 : vector<8x8xf32> to vector<8x8xbf16>
      %c0_72 = arith.constant 0 : index
      %c2_73 = arith.constant 2 : index
      %c0_74 = arith.constant 0 : index
      %c0_75 = arith.constant 0 : index
      %114 = vector.load %arg12[%c0_72, %c2_73, %c0_74, %c0_75] : memref<1x4x8x8xbf16, #tpu.memory_space<vmem>>, vector<1x1x8x8xbf16>
      %115 = vector.shape_cast %114 : vector<1x1x8x8xbf16> to vector<8x8xbf16>
      %116 = vector.shape_cast %113 : vector<8x8xbf16> to vector<1x1x8x8xbf16>
      tpu.vector_store %arg12[%c0_72, %c2_73, %c0_74, %c0_75], %116 {strides = array<i32>} : memref<1x4x8x8xbf16, #tpu.memory_space<vmem>>, vector<1x1x8x8xbf16>,
      %117 = vector.extract_strided_slice %89 {offsets = [0, 0, 16], sizes = [1, 8, 8], strides = [1, 1, 1]} : vector<1x8x32xf32> to vector<1x8x8xf32>
      %118 = vector.shape_cast %117 : vector<1x8x8xf32> to vector<8x8xf32>
      %119 = arith.truncf %118 : vector<8x8xf32> to vector<8x8xbf16>
      %c0_76 = arith.constant 0 : index
      %c2_77 = arith.constant 2 : index
      %c0_78 = arith.constant 0 : index
      %c0_79 = arith.constant 0 : index
      %120 = vector.load %arg13[%c0_76, %c2_77, %c0_78, %c0_79] : memref<1x4x8x8xbf16, #tpu.memory_space<vmem>>, vector<1x1x8x8xbf16>
      %121 = vector.shape_cast %120 : vector<1x1x8x8xbf16> to vector<8x8xbf16>
      %122 = vector.shape_cast %119 : vector<8x8xbf16> to vector<1x1x8x8xbf16>
      tpu.vector_store %arg13[%c0_76, %c2_77, %c0_78, %c0_79], %122 {strides = array<i32>} : memref<1x4x8x8xbf16, #tpu.memory_space<vmem>>, vector<1x1x8x8xbf16>,
      %123 = vector.extract_strided_slice %88 {offsets = [24, 0], sizes = [8, 8], strides = [1, 1]} : vector<32x8xf32> to vector<8x8xf32>
      %124 = arith.truncf %123 : vector<8x8xf32> to vector<8x8xbf16>
      %c0_80 = arith.constant 0 : index
      %c3_81 = arith.constant 3 : index
      %c0_82 = arith.constant 0 : index
      %c0_83 = arith.constant 0 : index
      %125 = vector.load %arg12[%c0_80, %c3_81, %c0_82, %c0_83] : memref<1x4x8x8xbf16, #tpu.memory_space<vmem>>, vector<1x1x8x8xbf16>
      %126 = vector.shape_cast %125 : vector<1x1x8x8xbf16> to vector<8x8xbf16>
      %127 = vector.shape_cast %124 : vector<8x8xbf16> to vector<1x1x8x8xbf16>
      tpu.vector_store %arg12[%c0_80, %c3_81, %c0_82, %c0_83], %127 {strides = array<i32>} : memref<1x4x8x8xbf16, #tpu.memory_space<vmem>>, vector<1x1x8x8xbf16>,
      %128 = vector.extract_strided_slice %89 {offsets = [0, 0, 24], sizes = [1, 8, 8], strides = [1, 1, 1]} : vector<1x8x32xf32> to vector<1x8x8xf32>
      %129 = vector.shape_cast %128 : vector<1x8x8xf32> to vector<8x8xf32>
      %130 = arith.truncf %129 : vector<8x8xf32> to vector<8x8xbf16>
      %c0_84 = arith.constant 0 : index
      %c3_85 = arith.constant 3 : index
      %c0_86 = arith.constant 0 : index
      %c0_87 = arith.constant 0 : index
      %131 = vector.load %arg13[%c0_84, %c3_85, %c0_86, %c0_87] : memref<1x4x8x8xbf16, #tpu.memory_space<vmem>>, vector<1x1x8x8xbf16>
      %132 = vector.shape_cast %131 : vector<1x1x8x8xbf16> to vector<8x8xbf16>
      %133 = vector.shape_cast %130 : vector<8x8xbf16> to vector<1x1x8x8xbf16>
      tpu.vector_store %arg13[%c0_84, %c3_85, %c0_86, %c0_87], %133 {strides = array<i32>} : memref<1x4x8x8xbf16, #tpu.memory_space<vmem>>, vector<1x1x8x8xbf16>,
    } else {
    }
    %c0 = arith.constant 0 : index
    %c0_1 = arith.constant 0 : index
    %c0_2 = arith.constant 0 : index
    %3 = vector.load %arg2[%c0, %c0_1, %c0_2] : memref<1x8x32xf32, #tpu.memory_space<vmem>>, vector<1x8x32xf32>
    %4 = vector.shape_cast %3 : vector<1x8x32xf32> to vector<8x32xf32>
    %5 = arith.truncf %4 : vector<8x32xf32> to vector<8x32xbf16>
    %c0_3 = arith.constant 0 : index
    %c0_4 = arith.constant 0 : index
    %6 = vector.load %arg4[%c0_3, %c0_4] : memref<32x32xbf16, #tpu.memory_space<vmem>>, vector<32x32xbf16>
    %cst = arith.constant dense<0.000000e+00> : vector<8x32xf32>
    %7 = tpu.matmul %5, %6, %cst {dimension_numbers = #tpu.dot_dimension_numbers<[1], [0], [0], [1], [0, 0, 1, 1], [], []>} : vector<8x32xbf16>, vector<32x32xbf16>, vector<8x32xf32> -> vector<8x32xf32>
    %c0_5 = arith.constant 0 : index
    %c0_6 = arith.constant 0 : index
    %8 = vector.load %arg5[%c0_5, %c0_6] : memref<1x32xf32, #tpu.memory_space<vmem>>, vector<1x32xf32>
    %9 = vector.broadcast %8 : vector<1x32xf32> to vector<8x32xf32>
    %10 = arith.addf %7, %9 : vector<8x32xf32>
    %11 = vector.shape_cast %10 : vector<8x32xf32> to vector<1x8x32xf32>
    %12 = vector.extract_strided_slice %11 {offsets = [0, 0, 0], sizes = [1, 8, 8], strides = [1, 1, 1]} : vector<1x8x32xf32> to vector<1x8x8xf32>
    %13 = vector.shape_cast %12 : vector<1x8x8xf32> to vector<8x8xf32>
    %14 = arith.truncf %13 : vector<8x8xf32> to vector<8x8xbf16>
    %c0_7 = arith.constant 0 : index
    %c0_8 = arith.constant 0 : index
    %c0_9 = arith.constant 0 : index
    %c0_10 = arith.constant 0 : index
    %15 = vector.load %arg11[%c0_7, %c0_8, %c0_9, %c0_10] : memref<1x4x8x8xbf16, #tpu.memory_space<vmem>>, vector<1x1x8x8xbf16>
    %16 = vector.shape_cast %15 : vector<1x1x8x8xbf16> to vector<8x8xbf16>
    %17 = vector.shape_cast %14 : vector<8x8xbf16> to vector<1x1x8x8xbf16>
    tpu.vector_store %arg11[%c0_7, %c0_8, %c0_9, %c0_10], %17 {strides = array<i32>} : memref<1x4x8x8xbf16, #tpu.memory_space<vmem>>, vector<1x1x8x8xbf16>,
    %18 = vector.extract_strided_slice %11 {offsets = [0, 0, 8], sizes = [1, 8, 8], strides = [1, 1, 1]} : vector<1x8x32xf32> to vector<1x8x8xf32>
    %19 = vector.shape_cast %18 : vector<1x8x8xf32> to vector<8x8xf32>
    %20 = arith.truncf %19 : vector<8x8xf32> to vector<8x8xbf16>
    %c0_11 = arith.constant 0 : index
    %c1 = arith.constant 1 : index
    %c0_12 = arith.constant 0 : index
    %c0_13 = arith.constant 0 : index
    %21 = vector.load %arg11[%c0_11, %c1, %c0_12, %c0_13] : memref<1x4x8x8xbf16, #tpu.memory_space<vmem>>, vector<1x1x8x8xbf16>
    %22 = vector.shape_cast %21 : vector<1x1x8x8xbf16> to vector<8x8xbf16>
    %23 = vector.shape_cast %20 : vector<8x8xbf16> to vector<1x1x8x8xbf16>
    tpu.vector_store %arg11[%c0_11, %c1, %c0_12, %c0_13], %23 {strides = array<i32>} : memref<1x4x8x8xbf16, #tpu.memory_space<vmem>>, vector<1x1x8x8xbf16>,
    %24 = vector.extract_strided_slice %11 {offsets = [0, 0, 16], sizes = [1, 8, 8], strides = [1, 1, 1]} : vector<1x8x32xf32> to vector<1x8x8xf32>
    %25 = vector.shape_cast %24 : vector<1x8x8xf32> to vector<8x8xf32>
    %26 = arith.truncf %25 : vector<8x8xf32> to vector<8x8xbf16>
    %c0_14 = arith.constant 0 : index
    %c2 = arith.constant 2 : index
    %c0_15 = arith.constant 0 : index
    %c0_16 = arith.constant 0 : index
    %27 = vector.load %arg11[%c0_14, %c2, %c0_15, %c0_16] : memref<1x4x8x8xbf16, #tpu.memory_space<vmem>>, vector<1x1x8x8xbf16>
    %28 = vector.shape_cast %27 : vector<1x1x8x8xbf16> to vector<8x8xbf16>
    %29 = vector.shape_cast %26 : vector<8x8xbf16> to vector<1x1x8x8xbf16>
    tpu.vector_store %arg11[%c0_14, %c2, %c0_15, %c0_16], %29 {strides = array<i32>} : memref<1x4x8x8xbf16, #tpu.memory_space<vmem>>, vector<1x1x8x8xbf16>,
    %30 = vector.extract_strided_slice %11 {offsets = [0, 0, 24], sizes = [1, 8, 8], strides = [1, 1, 1]} : vector<1x8x32xf32> to vector<1x8x8xf32>
    %31 = vector.shape_cast %30 : vector<1x8x8xf32> to vector<8x8xf32>
    %32 = arith.truncf %31 : vector<8x8xf32> to vector<8x8xbf16>
    %c0_17 = arith.constant 0 : index
    %c3 = arith.constant 3 : index
    %c0_18 = arith.constant 0 : index
    %c0_19 = arith.constant 0 : index
    %33 = vector.load %arg11[%c0_17, %c3, %c0_18, %c0_19] : memref<1x4x8x8xbf16, #tpu.memory_space<vmem>>, vector<1x1x8x8xbf16>
    %34 = vector.shape_cast %33 : vector<1x1x8x8xbf16> to vector<8x8xbf16>
    %35 = vector.shape_cast %32 : vector<8x8xbf16> to vector<1x1x8x8xbf16>
    tpu.vector_store %arg11[%c0_17, %c3, %c0_18, %c0_19], %35 {strides = array<i32>} : memref<1x4x8x8xbf16, #tpu.memory_space<vmem>>, vector<1x1x8x8xbf16>,
    %c0_20 = arith.constant 0 : index
    %c0_21 = arith.constant 0 : index
    %c0_22 = arith.constant 0 : index
    %c0_23 = arith.constant 0 : index
    %36 = vector.load %arg11[%c0_20, %c0_21, %c0_22, %c0_23] : memref<1x4x8x8xbf16, #tpu.memory_space<vmem>>, vector<1x4x8x8xbf16>
    %37 = vector.shape_cast %36 : vector<1x4x8x8xbf16> to vector<4x8x8xbf16>
    %c0_24 = arith.constant 0 : index
    %c0_25 = arith.constant 0 : index
    %c0_26 = arith.constant 0 : index
    %c0_27 = arith.constant 0 : index
    %38 = vector.load %arg12[%c0_24, %c0_25, %c0_26, %c0_27] : memref<1x4x8x8xbf16, #tpu.memory_space<vmem>>, vector<1x4x8x8xbf16>
    %39 = vector.shape_cast %38 : vector<1x4x8x8xbf16> to vector<4x8x8xbf16>
    "tpu.trace_start"() <{level = 10 : i32, message = "gqd,gdk->gqk"}> : () -> ()
    %cst_28 = arith.constant dense<0.000000e+00> : vector<4x8x8xf32>
    %40 = tpu.matmul %37, %39, %cst_28 {dimension_numbers = #tpu.dot_dimension_numbers<[2], [1], [1], [2], [0, 0, 0, 1, 1, 2], [0], [0]>} : vector<4x8x8xbf16>, vector<4x8x8xbf16>, vector<4x8x8xf32> -> vector<4x8x8xf32>
    "tpu.trace_stop"() : () -> ()
    %c0_29 = arith.constant 0 : index
    %c0_30 = arith.constant 0 : index
    %c0_31 = arith.constant 0 : index
    %41 = vector.load %arg3[%c0_29, %c0_30, %c0_31] : memref<1x8x8xbf16, #tpu.memory_space<vmem>>, vector<1x8x8xbf16>
    %42 = arith.extf %41 : vector<1x8x8xbf16> to vector<1x8x8xf32>
    %cst_32 = arith.constant -1.000000e+05 : f32
    %43 = vector.broadcast %cst_32 : f32 to vector<1x8x8xf32>
    %44 = arith.mulf %42, %43 : vector<1x8x8xf32>
    %45 = vector.shape_cast %40 : vector<4x8x8xf32> to vector<1x4x8x8xf32>
    %46 = vector.shape_cast %44 : vector<1x8x8xf32> to vector<1x1x8x8xf32>
    %47 = vector.broadcast %46 : vector<1x1x8x8xf32> to vector<1x4x8x8xf32>
    %48 = arith.addf %45, %47 : vector<1x4x8x8xf32>
    %cst_33 = arith.constant dense<0xFF800000> : vector<1x4x8xf32>
    %49 = vector.multi_reduction <maximumf>, %48, %cst_33 [3] : vector<1x4x8x8xf32> to vector<1x4x8xf32>
    %50 = vector.shape_cast %49 : vector<1x4x8xf32> to vector<1x4x8x1xf32>
    %51 = vector.broadcast %50 : vector<1x4x8x1xf32> to vector<1x4x8x8xf32>
    %52 = arith.subf %48, %51 : vector<1x4x8x8xf32>
    %53 = math.exp %52 : vector<1x4x8x8xf32>
    %cst_34 = arith.constant dense<0.000000e+00> : vector<1x4x8xf32>
    %54 = vector.multi_reduction <add>, %53, %cst_34 [3] : vector<1x4x8x8xf32> to vector<1x4x8xf32>
    %55 = vector.shape_cast %54 : vector<1x4x8xf32> to vector<1x4x8x1xf32>
    %56 = vector.shape_cast %53 : vector<1x4x8x8xf32> to vector<4x8x8xf32>
    %57 = arith.truncf %56 : vector<4x8x8xf32> to vector<4x8x8xbf16>
    %c0_35 = arith.constant 0 : index
    %c0_36 = arith.constant 0 : index
    %c0_37 = arith.constant 0 : index
    %c0_38 = arith.constant 0 : index
    %58 = vector.load %arg13[%c0_35, %c0_36, %c0_37, %c0_38] : memref<1x4x8x8xbf16, #tpu.memory_space<vmem>>, vector<1x4x8x8xbf16>
    %59 = vector.shape_cast %58 : vector<1x4x8x8xbf16> to vector<4x8x8xbf16>
    "tpu.trace_start"() <{level = 10 : i32, message = "gqk,gkd->gqd"}> : () -> ()
    %cst_39 = arith.constant dense<0.000000e+00> : vector<4x8x8xf32>
    %60 = tpu.matmul %57, %59, %cst_39 {dimension_numbers = #tpu.dot_dimension_numbers<[2], [1], [1], [2], [0, 0, 0, 1, 1, 2], [0], [0]>} : vector<4x8x8xbf16>, vector<4x8x8xbf16>, vector<4x8x8xf32> -> vector<4x8x8xf32>
    "tpu.trace_stop"() : () -> ()
    %61 = vector.shape_cast %60 : vector<4x8x8xf32> to vector<1x4x8x8xf32>
    %62 = tpu.reciprocal %55 {approx = true} : vector<1x4x8x1xf32> -> vector<1x4x8x1xf32>
    %63 = vector.broadcast %62 : vector<1x4x8x1xf32> to vector<1x4x8x8xf32>
    %64 = arith.mulf %61, %63 : vector<1x4x8x8xf32>
    %65 = vector.extract_strided_slice %64 {offsets = [0, 0, 0, 0], sizes = [1, 1, 8, 8], strides = [1, 1, 1, 1]} : vector<1x4x8x8xf32> to vector<1x1x8x8xf32>
    %66 = vector.shape_cast %65 : vector<1x1x8x8xf32> to vector<1x8x8xf32>
    %67 = vector.extract_strided_slice %64 {offsets = [0, 1, 0, 0], sizes = [1, 1, 8, 8], strides = [1, 1, 1, 1]} : vector<1x4x8x8xf32> to vector<1x1x8x8xf32>
    %68 = vector.shape_cast %67 : vector<1x1x8x8xf32> to vector<1x8x8xf32>
    %69 = vector.extract_strided_slice %64 {offsets = [0, 2, 0, 0], sizes = [1, 1, 8, 8], strides = [1, 1, 1, 1]} : vector<1x4x8x8xf32> to vector<1x1x8x8xf32>
    %70 = vector.shape_cast %69 : vector<1x1x8x8xf32> to vector<1x8x8xf32>
    %71 = vector.extract_strided_slice %64 {offsets = [0, 3, 0, 0], sizes = [1, 1, 8, 8], strides = [1, 1, 1, 1]} : vector<1x4x8x8xf32> to vector<1x1x8x8xf32>
    %72 = vector.shape_cast %71 : vector<1x1x8x8xf32> to vector<1x8x8xf32>
    %73 = tpu.concatenate %66, %68, %70, %72 in 2 : vector<1x8x8xf32>, vector<1x8x8xf32>, vector<1x8x8xf32>, vector<1x8x8xf32> -> vector<1x8x32xf32>
    %c0_40 = arith.constant 0 : index
    %c0_41 = arith.constant 0 : index
    %c0_42 = arith.constant 0 : index
    %74 = vector.load %arg10[%c0_40, %c0_41, %c0_42] : memref<1x8x32xf32, #tpu.memory_space<vmem>>, vector<1x8x32xf32>
    tpu.vector_store %arg10[%c0_40, %c0_41, %c0_42], %73 {strides = array<i32>} : memref<1x8x32xf32, #tpu.memory_space<vmem>>, vector<1x8x32xf32>,
    return
  }
  func.func @transform_0(%arg0: i32, %arg1: i32) -> (i32, i32, i32) {
    %c0_i32 = arith.constant 0 : i32
    %c0_i32_0 = arith.constant 0 : i32
    %c0_i32_1 = arith.constant 0 : i32
    return %arg0, %c0_i32, %c0_i32_0 : i32, i32, i32
  }
  func.func @transform_1(%arg0: i32, %arg1: i32) -> (i32, i32, i32) {
    %c0_i32 = arith.constant 0 : i32
    %c0_i32_0 = arith.constant 0 : i32
    return %arg0, %arg1, %c0_i32 : i32, i32, i32
  }
  func.func @transform_2(%arg0: i32, %arg1: i32) -> (i32, i32) {
    %c0_i32 = arith.constant 0 : i32
    %c0_i32_0 = arith.constant 0 : i32
    %c0_i32_1 = arith.constant 0 : i32
    return %c0_i32, %c0_i32_0 : i32, i32
  }
  func.func @transform_3(%arg0: i32, %arg1: i32) -> (i32, i32) {
    %c0_i32 = arith.constant 0 : i32
    %c0_i32_0 = arith.constant 0 : i32
    %c0_i32_1 = arith.constant 0 : i32
    return %c0_i32, %c0_i32_0 : i32, i32
  }
  func.func @transform_4(%arg0: i32, %arg1: i32) -> (i32, i32) {
    %c0_i32 = arith.constant 0 : i32
    %c0_i32_0 = arith.constant 0 : i32
    %c0_i32_1 = arith.constant 0 : i32
    return %c0_i32, %c0_i32_0 : i32, i32
  }
  func.func @transform_5(%arg0: i32, %arg1: i32) -> (i32, i32) {
    %c0_i32 = arith.constant 0 : i32
    %c0_i32_0 = arith.constant 0 : i32
    %c0_i32_1 = arith.constant 0 : i32
    return %c0_i32, %c0_i32_0 : i32, i32
  }
  func.func @transform_6(%arg0: i32, %arg1: i32) -> (i32, i32) {
    %c0_i32 = arith.constant 0 : i32
    %c0_i32_0 = arith.constant 0 : i32
    %c0_i32_1 = arith.constant 0 : i32
    return %c0_i32, %c0_i32_0 : i32, i32
  }
  func.func @transform_7(%arg0: i32, %arg1: i32) -> (i32, i32) {
    %c0_i32 = arith.constant 0 : i32
    %c0_i32_0 = arith.constant 0 : i32
    %c0_i32_1 = arith.constant 0 : i32
    return %c0_i32, %c0_i32_0 : i32, i32
  }
  func.func @transform_8(%arg0: i32, %arg1: i32) -> (i32, i32, i32) {
    %c0_i32 = arith.constant 0 : i32
    %c0_i32_0 = arith.constant 0 : i32
    return %arg0, %arg1, %c0_i32 : i32, i32, i32
  }
}

</mosaic_0001>

<bundles_post_ra>
// kernel: tpu_custom_call.1
= control target key start
LH: loop header
LB: loop body
LE: loop exit
PB: predicated region body
PF: predicated region fallthrough
CT: control target
= control target key end

     0   :  { %s2214_s0 = inlined_call_operand.hbm [shape: f32[2,8,32], index: 0, kind: input, shape index: {}]   ;;  %s2215_s1 = inlined_call_operand.hbm [shape: bf16[2,8,8], index: 1, kind: input, shape index: {}]   ;;  %s2216_s2 = inlined_call_operand.hbm [shape: bf16[32,32], index: 2, kind: input, shape index: {}]   ;;  %s2217_s3 = inlined_call_operand.vmem [shape: f32[1,32], index: 3, kind: input, shape index: {}]   ;;  %s2218_s4 = inlined_call_operand.hbm [shape: bf16[32,32], index: 4, kind: input, shape index: {}]   ;;  %s2219_s5 = inlined_call_operand.vmem [shape: f32[1,32], index: 5, kind: input, shape index: {}]   ;;  %s2220_s6 = inlined_call_operand.vmem [shape: bf16[32,32], index: 6, kind: input, shape index: {}]   ;;  %s2221_s7 = inlined_call_operand.vmem [shape: f32[1,32], index: 7, kind: input, shape index: {}]   ;;  %s2222_s8 = inlined_call_operand.hbm [shape: f32[2,8,32], index: 8, kind: output, shape index: {}]  }
   0x1   :  { %2230 = sst [smem:[#allocation22_spill]] %s2214_s0 }
   0x2   :  { %2231 = sst [smem:[#allocation23_spill]] %s2216_s2 }
   0x3   :  { %2232 = sst [smem:[#allocation24_spill]] %s2218_s4 }
   0x4   :  { %13 = vsyncpa [#allocation6], 0 }
   0x5   :  { %15 = vsyncpa [#allocation6 + $0x1], 0 }
   0x6   :  { %16 = vsyncpa [#allocation9], 0 }
   0x7   :  { %18 = vsyncpa [#allocation9 + $0x1], 0 }
   0x8   :  { %19 = vsyncpa [#allocation12], 0 }
   0x9   :  { %20 = vsyncpa [#allocation7], 0 }
   0xa   :  { %22 = vsyncpa [#allocation7 + $0x1], 0  ;;  %s1820_s27 = smov 0   ;;  %s1822_s28 = smov 0  }
   0xb   :  { %s1824_s29 = smov 0   ;;  %s1826_s30 = smov 0  }
   0xc   :  { %s1828_s9 = smov 0   ;;  %s1830_s10 = smov 0  }
   0xd LB: > { %2233 = sst [smem:[#allocation19_spill]] %s1738_s27  ;;  %s1851_s11 = sadd.s32 4294967295, %s1758_s10   ;;  %s1758_s10 = sphi %s1830_s10, %s28_s10   ;;  %s1754_s9 = sphi %s1828_s9, %s2263_s9   ;;  %s1750_s30 = sphi %s1826_s30, %s2262_s30   ;;  %s1746_s29 = sphi %s1824_s29, %s2261_s29   ;;  %s1742_s28 = sphi %s1822_s28, %s2260_s28   ;;  %s1738_s27 = sphi %s1820_s27, %s2259_s27  }
   0xe   : > { %s1288_s12 = sadd.s32 4294967294, %s1758_s10   ;;  %p60_p0 = scmp.ne.s32.totalorder %s1742_s28, %s1738_s27 }
   0xf   : > { %p2223_p1 = scmp.eq.s32.totalorder %s1851_s11, 0  ;;  %p246_p3 = scmp.eq.s32.totalorder %s1288_s12, 1 }
  0x10   : > { %p1289_p5 = scmp.ge.s32.totalorder %s1758_s10, 1  ;;  %p253_p7 = scmp.lt.s32.totalorder %s1758_s10, 3 }
  0x11   : > { %p1860_p4 = por %p2223_p1, %p60_p0  ;;  %p1865_p6 = por %p246_p3, %p60_p0 }
  0x12   : > { %p1870_p8 = pnand %p1289_p5, %p253_p7  ;;  %s1760_s16 = smov [#allocation10]  }
  0x13   : > { %s2234_s13 = scalar_select %p1860_p4, 1, 0 }
  0x14   : > { %s2235_s14 = scalar_select %p1865_p6, 1, 0 }
  0x15   : > { %s2237_s15 = scalar_select %p1870_p8, 1, 0 }
  0x16   : > { %2236 = sst [smem:[#allocation20_spill]] %s2235_s14  ;;  %s265_s17 = sshll.u32 %s1760_s16, 4  ;;  %s1874_s17 = int_to_ptr.vmem [resolvable:$true] %s265_s17 }
  0x17   : > { %p1442_p9 = pneg %p1870_p8  ;;  %s1761_s19 = smov [#allocation11]  }
  0x18   : > { %s281_s20 = sshll.u32 %s1761_s19, 4  ;;  %s2239_s2 = sld [smem:[#allocation23_spill]]  ;;  %s1885_s20 = int_to_ptr.vmem [resolvable:$true] %s281_s20 }
  0x19   : > { %p1881_p11 = pnand %p1442_p9, %p2223_p1 }
  0x1b   : > { %p1550_p13 = pneg %p1881_p11 }
  0x1e   : > { %s1548_s23 = scalar_lea.hbm %s2239_s2, 256 }
  0x1f   : > { %p1549_p12 = scmp.ne.s32.totalorder %s2239_s2, %s1548_s23  ;;  %p1555_p5 = scmp.lt.u32.totalorder %s1548_s23, %s2239_s2 }
  0x21   : > { %p1551_p0 = pnand %p1550_p13, %p1549_p12 }
  0x23   : > { %p1552_p3 = pneg %p1551_p0 }
  0x25   : > { %p1557_p7 = pnand %p1555_p5, %p1552_p3 }
  0x27   : > { %1560 = shalt.err (!%p1557_p7)
}
  0x28   : > { %s1561_s16 = scalar_lea.vmem %s1874_s17, 256  ;;  %p1569_p2 = scmp.lt.s32.totalorder %s1874_s17, %s1874_s17 }
  0x29   : > { %p1562_p9 = scmp.ne.s32.totalorder %s1874_s17, %s1561_s16  ;;  %p1570_p12 = scmp.lt.s32.totalorder %s1561_s16, %s1561_s16 }
  0x2b   : > { %p1564_p10 = pnand %p1562_p9, %p1550_p13  ;;  %p1571_p0 = por %p1570_p12, %p1569_p2 }
  0x2d   : > { %p1565_p1 = pneg %p1564_p10 }
  0x2f   : > { %p1572_p6 = pnand %p1571_p0, %p1565_p1 }
  0x31   : > { %1575 = shalt.err (!%p1572_p6)
}
  0x32   : > { %s1762_s19 = smov 64   ;;  %s1763_s21 = smov 4  }
  0x33   : > { %1445 = dma.hbm_to_vmem [thread:$0]  (!%p1881_p11), %s2239_s2, 256, %s1874_s17, [#allocation9], %s1762_s19, %s1762_s19, %s1763_s21  }
  0x34   : > { %s2240_s4 = sld [smem:[#allocation24_spill]] }
  0x3a   : > { %s1576_s26 = scalar_lea.hbm %s2240_s4, 256 }
  0x3b   : > { %p1577_p2 = scmp.ne.s32.totalorder %s2240_s4, %s1576_s26  ;;  %p1583_p10 = scmp.lt.u32.totalorder %s1576_s26, %s2240_s4 }
  0x3d   : > { %p1579_p1 = pnand %p1577_p2, %p1550_p13 }
  0x3f   : > { %p1580_p6 = pneg %p1579_p1 }
  0x41   : > { %p1585_p3 = pnand %p1583_p10, %p1580_p6 }
  0x43   : > { %1588 = shalt.err (!%p1585_p3)
}
  0x44   : > { %s1589_s17 = scalar_lea.vmem %s1885_s20, 256  ;;  %p1597_p12 = scmp.lt.s32.totalorder %s1885_s20, %s1885_s20 }
  0x45   : > { %p1590_p5 = scmp.ne.s32.totalorder %s1885_s20, %s1589_s17  ;;  %p1598_p0 = scmp.lt.s32.totalorder %s1589_s17, %s1589_s17 }
  0x47   : > { %p1592_p7 = pnand %p1590_p5, %p1550_p13  ;;  %p1599_p2 = por %p1598_p0, %p1597_p12 }
  0x49   : > { %p1593_p9 = pneg %p1592_p7 }
  0x4b   : > { %p1600_p1 = pnand %p1599_p2, %p1593_p9 }
  0x4d   : > { %1603 = shalt.err (!%p1600_p1)
}
  0x4e   : > { %1448 = dma.hbm_to_vmem [thread:$0]  (!%p1881_p11), %s2240_s4, 256, %s1885_s20, [#allocation12], %s1762_s19, %s1762_s19, %s1763_s21  }
  0x4f   : > { %s40_s22 = sadd.s32 1, %s1754_s9  ;;  %s47_s23 = sadd.s32 1, %s1746_s29 }
  0x50   : > { %p42_p13 = scmp.ge.s32.totalorder %s40_s22, 2  ;;  %p54_p6 = scmp.ne.s32.totalorder %s1746_s29, %s1742_s28 }
  0x51   : > { %p55_p10 = scmp.eq.s32.totalorder %s1758_s10, 0  ;;  %p1462_p3 = scmp.lt.s32.totalorder %s1758_s10, 2 }
  0x52   : > { %s2265_s22 = smov (%p42_p13, %s40_s22), 0  ;;  %p2242_p7 = scmp.eq.s32.totalorder %s1851_s11, 1 }
  0x53   : > { %2241 = sst [smem:[#allocation21_spill]] %s2265_s22  ;;  %p56_p5 = por %p55_p10, %p54_p6 }
  0x54   : > { %p1949_p9 = por %p2242_p7, %p54_p6  ;;  %s44_s24 = ssub.s32 %s1754_s9, %s2265_s22 }
  0x55   : > { %s1956_s25 = sand.u32 1, %s1746_s29   ;;  %p45_p11 = scmp.eq.s32.totalorder %s44_s24, 0 }
  0x56   : > { %s2243_s18 = scalar_select %p1949_p9, 1, 0 }
  0x57   : > { %s1293_s20 = sshll.u32 %s1956_s25, 3  ;;  %s1294_s19 = sshll.u32 %s1754_s9, 7 }
  0x58   : > { %s1961_s21 = scalar_select %p45_p11, %s1746_s29, %s47_s23  }
  0x59   : > { %s2244_s0 = sld [smem:[#allocation22_spill]]  ;;  %s308_s17 = scalar_lea.vmem [#allocation5], %s1293_s20 }
  0x5a   : > { %s315_s27 = sshll.u32 %s308_s17, 4  ;;  %p1970_p12 = pnand %p1462_p3, %p56_p5  ;;  %s1974_s27 = int_to_ptr.vmem [resolvable:$true] %s315_s27 }
  0x5b   : > { %s305_s24 = scalar_lea.sflag [#allocation6], %s1956_s25 }
  0x5c   : > { %p1606_p2 = pneg %p1970_p12 }
  0x5f   : > { %s1966_s16 = scalar_lea.hbm %s2244_s0, %s1294_s19  ;;  %s1609_s12 = scalar_lea.hbm %s2244_s0, 256 }
  0x60   : > { %s1604_s26 = scalar_lea.hbm %s1966_s16, 128  ;;  %p1610_p6 = scmp.lt.u32.totalorder %s1966_s16, %s2244_s0 }
  0x61   : > { %p1605_p0 = scmp.ne.s32.totalorder %s1966_s16, %s1604_s26  ;;  %p1611_p10 = scmp.lt.u32.totalorder %s1609_s12, %s1604_s26 }
  0x62   : > { %p1613_p5 = scmp.lt.u32.totalorder %s1604_s26, %s1966_s16 }
  0x63   : > { %p1607_p1 = pnand %p1606_p2, %p1605_p0  ;;  %p1612_p3 = por %p1611_p10, %p1610_p6 }
  0x65   : > { %p1608_p13 = pneg %p1607_p1  ;;  %p1614_p7 = por %p1613_p5, %p1612_p3 }
  0x67   : > { %p1615_p11 = pnand %p1614_p7, %p1608_p13 }
  0x69   : > { %1618 = shalt.err (!%p1615_p11)
}
  0x6a   : > { %s1619_s23 = scalar_lea.vmem %s1974_s27, 128  ;;  %s1764_s20 = smov [#allocation5]  }
  0x6b   : > { %p1620_p0 = scmp.ne.s32.totalorder %s1974_s27, %s1619_s23  ;;  %s1624_s19 = sshll.u32 %s1764_s20, 4  ;;  %s1625_s19 = int_to_ptr.vmem [resolvable:$false] %s1624_s19 }
  0x6c   : > { %s1626_s2 = scalar_lea.vmem %s1625_s19, 256  ;;  %p1627_p4 = scmp.lt.s32.totalorder %s1974_s27, %s1625_s19 }
  0x6d   : > { %p1622_p1 = pnand %p1620_p0, %p1606_p2  ;;  %p1628_p6 = scmp.lt.s32.totalorder %s1626_s2, %s1619_s23 }
  0x6f   : > { %p1623_p9 = pneg %p1622_p1  ;;  %p1629_p10 = por %p1628_p6, %p1627_p4 }
  0x71   : > { %p1630_p3 = pnand %p1629_p10, %p1623_p9 }
  0x73   : > { %1633 = shalt.err (!%p1630_p3)
}
  0x74   : > { %1452 = dma.hbm_to_vmem [thread:$0]  (!%p1970_p12), %s1966_s16, 128, %s1974_s27, %s305_s24  }
  0x75   : > { %s1295_s26 = sshll.u32 %s1956_s25, 2  ;;  %s1296_s12 = sshll.u32 %s1754_s9, 6 }
  0x76   : > { %s2008_s0 = scalar_lea.hbm %s2215_s1, %s1296_s12  ;;  %s326_s23 = scalar_lea.vmem [#allocation8], %s1295_s26 }
  0x77   : > { %s334_s19 = sshll.u32 %s326_s23, 4  ;;  %s2246_s2 = sand.u32 1, %s1758_s10   ;;  %s335_s19 = int_to_ptr.vmem [resolvable:$true] %s334_s19 }
  0x78   : > { %s323_s4 = scalar_lea.sflag [#allocation9], %s2246_s2  ;;  %s1634_s22 = scalar_lea.hbm %s2008_s0, 64 }
  0x79   : > { %p1635_p4 = scmp.ne.s32.totalorder %s2008_s0, %s1634_s22  ;;  %s1639_s27 = scalar_lea.hbm %s2215_s1, 128 }
  0x7a   : > { %p1640_p5 = scmp.lt.u32.totalorder %s2008_s0, %s2215_s1  ;;  %p1641_p7 = scmp.lt.u32.totalorder %s1639_s27, %s1634_s22 }
  0x7b   : > { %p1637_p9 = pnand %p1635_p4, %p1606_p2  ;;  %p1643_p0 = scmp.lt.u32.totalorder %s1634_s22, %s2008_s0 }
  0x7c   : > { %p1642_p11 = por %p1641_p7, %p1640_p5 }
  0x7d   : > { %p1638_p13 = pneg %p1637_p9 }
  0x7e   : > { %p1644_p1 = por %p1643_p0, %p1642_p11 }
  0x80   : > { %p1645_p6 = pnand %p1644_p1, %p1638_p13 }
  0x82   : > { %1648 = shalt.err (!%p1645_p6)
}
  0x83   : > { %s1649_s26 = scalar_lea.vmem %s335_s19, 64  ;;  %s1765_s17 = smov [#allocation8]  }
  0x84   : > { %p1650_p10 = scmp.ne.s32.totalorder %s335_s19, %s1649_s26  ;;  %s1654_s20 = sshll.u32 %s1765_s17, 4  ;;  %s1655_s20 = int_to_ptr.vmem [resolvable:$false] %s1654_s20 }
  0x85   : > { %s1656_s23 = scalar_lea.vmem %s1655_s20, 128  ;;  %p1657_p9 = scmp.lt.s32.totalorder %s335_s19, %s1655_s20 }
  0x86   : > { %p1652_p3 = pnand %p1650_p10, %p1606_p2  ;;  %p1658_p8 = scmp.lt.s32.totalorder %s1656_s23, %s1649_s26 }
  0x88   : > { %p1653_p4 = pneg %p1652_p3  ;;  %p1659_p5 = por %p1658_p8, %p1657_p9 }
  0x8a   : > { %p1660_p7 = pnand %p1659_p5, %p1653_p4 }
  0x8c   : > { %1663 = shalt.err (!%p1660_p7)
}
  0x8d   : > { %1455 = dma.hbm_to_vmem [thread:$0]  (!%p1970_p12), %s2008_s0, 64, %s335_s19, %s323_s4  }
  0x8e   : > { %p2247_p13 = scmp.ne.s32.totalorder %s2237_s15, 0 }
  0x8f   : > { %s2034_s22 = sand.u32 (!%p2247_p13), 1, %s1742_s28   ;;  %p2248_p8 = scmp.ne.s32.totalorder (!%p2247_p13), %s2234_s13, 0 }
  0x90   : > { %343 = sbr.rel (%p2247_p13) target bundleno = 1313 (0x521), region = 52  ;;  %s1298_s2 = sshll.u32 (!%p2247_p13), %s2034_s22, 3 }
  0x91   : > { %s346_s25 = scalar_lea.sflag (!%p2247_p13), [#allocation6], %s2034_s22  ;;  %s349_s16 = scalar_lea.vmem (!%p2247_p13), [#allocation5], %s1298_s2 }
  0x97   : > { %1717 = dma.done.wait (%p2248_p8), %s346_s25, 128  }
  0x98   : > { %1719 = vsyncadd (%p2248_p8), %s346_s25, 4294967168  ;;  %s354_s0 = sand.u32 1, %s1851_s11   ;;  %s1299_s4 = sshll.u32 %s2034_s22, 2 }
  0x99   : > { %s355_s15 = scalar_lea.sflag [#allocation9], %s354_s0  ;;  %s2046_s14 = scalar_lea.vmem [#allocation8], %s1299_s4 }
  0x9a   : > { %1721 = dma.done.wait (%p2248_p8), %s355_s15, 64  }
  0x9b   : > { %1723 = vsyncadd (%p2248_p8), %s355_s15, 4294967232  ;;  %p2249_p12 = scmp.eq.s32.totalorder %s1851_s11, 0 }
  0x9d   : > { %1725 = dma.done.wait (%p2249_p12), [#allocation9], 256   ;;  %p2250_p2 = pmov %p2249_p12 }
  0x9f   : > { %1727 = vsyncadd (%p2250_p2), [#allocation9], 4294967040  ;;  %p2251_p11 = pmov %p2250_p2 }
  0xa0   : > { %p2252_p0 = pmov %p2250_p2 }
  0xa1   : > { %1729 = dma.done.wait (%p2251_p11), [#allocation12], 256  }
  0xa2   : > { %1731 = vsyncadd (%p2252_p0), [#allocation12], 4294967040  ;;  %v1766_v0 = vmov 0.0   ;;  %vm1767_vm0 = vmmov 0   ;;  %v1526_v1 = vld [vmem:[#allocation11] sm:$0xff]   ;;  %v1527_v2 = vld [vmem:[#allocation11 + $0x8] sm:$0xff]  }
  0xa3   : > { %1356 = vmatprep.subr.bf16.mxu0 %v1766_v0  ;;  %1360 = vmatprep.mubr.msk.bf16.mxu0 %vm1767_vm0, %v1766_v0  ;;  %v409_v3 = vld [vmem:[%s349_s16] sm:$0xff]  ;;  %vm434_vm1 = vcmask 261120   ;;  %v1528_v5 = vld [vmem:[#allocation10] sm:$0xff]   ;;  %v1530_v11 = vld [vmem:[%s2220_s6] sm:$0xff]   ;;  %vm574_vm2 = vcmask 60416   ;;  %s1768_s24 = smov 104  }
  0xa4   : > { %1364 = vmatprep.subr.bf16.mxu1 %v1766_v0  ;;  %1368 = vmatprep.mubr.msk.bf16.mxu1 %vm1767_vm0, %v1766_v0  ;;  %v410_v4 = vpack.c.bf16 %v409_v3, %v409_v3  ;;  %v1529_v6 = vld [vmem:[#allocation10 + $0x8] sm:$0xff]   ;;  %v1312_v12 = vld [vmem:[%s2217_s3] ss:$0 sm:$0xff]  ;;  %s1769_s12 = smov 120   ;;  %s1770_s26 = smov 112   ;;  %v1531_v21 = vld [vmem:[%s2220_s6 + $0x8] sm:$0xff]  }
  0xa5   : > { %1357 = vmatpush3.bf16.msra.mxu0 %v1526_v1  ;;  %1365 = vmatpush3.bf16.msra.mxu1 %v1530_v11  ;;  %v1303_v19 = vld [vmem:[%s2219_s5] ss:$0 sm:$0xff]  ;;  %vm707_vm3 = vcmask 1043456   ;;  %vm703_vm4 = vcmask 64512   ;;  %s1771_s4 = smov 8   ;;  %s1772_s15 = smov 16  }
  0xa6   : > { %1358 = vmatprep.subr.bf16.mxu0 %v1766_v0  ;;  %1366 = vmatprep.subr.bf16.mxu1 %v1766_v0  ;;  %v1307_v45 = vld [vmem:[%s2221_s7] ss:$0 sm:$0xff]  ;;  %vm1145_vm5 = vcmask 130048   ;;  %s1326_s11 = sshll.u32 %s1750_s30, 7  ;;  %s403_s13 = scalar_lea.vmem [#allocation13], %s1298_s2  ;;  %vm1147_vm6 = vcmask 195584  }
  0xa7   : > { %v889_v54 = vld [vmem:[%s2046_s14] sm:$0xf]  ;;  %s1773_s14 = smov 24   ;;  %s1165_s19 = sshll.u32 %s403_s13, 4  ;;  %s2166_s19 = int_to_ptr.vmem [resolvable:$true] %s1165_s19 }
  0xa8   : > { %v890_v55 = vunpack.c.l.bf16 %v889_v54  ;;  %s1151_s30 = scalar_lea.sflag [#allocation7], %s2034_s22  ;;  %s1664_s2 = scalar_lea.vmem %s2166_s19, 128 }
  0xa9   : > { %1359 = vmatpush3.bf16.msra.mxu0 %v1527_v2  ;;  %1367 = vmatpush3.bf16.msra.mxu1 %v1531_v21  ;;  %p1665_p1 = scmp.ne.s32.totalorder %s2166_s19, %s1664_s2  ;;  %p2253_p6 = scmp.ne.s32.totalorder %s2243_s18, 0 }
  0xaa   : > { %1372 = vmatprep.subr.bf16.mxu0 %v1766_v0  ;;  %1380 = vmatprep.subr.bf16.mxu1 %v1766_v0  ;;  %v891_v56 = vmul.f32 -100000.0, %v890_v55 }
  0xab   : > { %p1666_p10 = pnand %p1665_p1, %p2253_p6 }
  0xac   : > { %1361 = vmatmul.mubr.msk.bf16.vlgmr.msra.gmra.mrb[0].mxu0 %vm434_vm1, %v410_v4  ;;  %1369 = vmatmul.mubr.msk.bf16.vlgmr.msra.gmra.mrb[0].mxu1 %vm434_vm1, %v410_v4 }
  0xad   : > { %1373 = vmatpush3.bf16.msra.mxu0 %v1528_v5  ;;  %1376 = vmatprep.mubr.msk.bf16.mxu0 %vm1767_vm0, %v1766_v0  ;;  %p1667_p3 = pneg %p1666_p10 }
  0xae   : > { %1374 = vmatprep.subr.bf16.mxu0 %v1766_v0  ;;  %1382 = vmatprep.mubr.msk.bf16.mxu1 %vm1767_vm0, %v1766_v0 }
  0xb1   : > { %1375 = vmatpush3.bf16.msra.mxu0 %v1529_v6 }
  0xb2   : > { %1386 = vmatprep.subr.bf16.mxu0 %v1766_v0 }
  0xb4   : > { %1377 = vmatmul.mubr.msk.bf16.vlgmr.msra.gmra.mrb[4].mxu0 %vm434_vm1, %v410_v4 }
  0xb5   : > { %1388 = vmatprep.mubr.msk.bf16.mxu0 %vm1767_vm0, %v1766_v0 }
 0x17f   : > { %v472_v7 = vpop.f32.mrb[0].mxu0  ;;  %v535_v46 = vpop.f32.mrb[0].mxu1 }
 0x180   : > { %v1362_v8 = vpop.f32.mrb[1].mxu0  ;;  %v473_v20 = vadd.f32 %v1303_v19, %v472_v7  ;;  %v536_v47 = vadd.f32 %v1307_v45, %v535_v46  ;;  %v1370_v48 = vpop.f32.mrb[1].mxu1 }
 0x181   : > { %v475_v9 = vpop.f32.mrb[2].mxu0  ;;  %v538_v49 = vpop.f32.mrb[2].mxu1 }
 0x182   : > { %v1363_v10 = vpop.f32.mrb[3].mxu0  ;;  %v576_v50 = vpack.c.bf16 %v536_v47, %v536_v47  ;;  %v1371_v51 = vpop.f32.mrb[3].mxu1 }
 0x184   : > { %577 = vst.msk [vmem:[#allocation4] sm:$0xf] %vm574_vm2, %v576_v50 }
 0x187   : > { %v668_v13 = vpop.f32.mrb[4].mxu0 }
 0x188   : > { %v669_v14 = vadd.f32 %v1312_v12, %v668_v13  ;;  %v1378_v15 = vpop.f32.mrb[5].mxu0 }
 0x189   : > { %v671_v16 = vpop.f32.mrb[6].mxu0 }
 0x18a   : > { %v674_v17 = vpack.c.bf16 %v669_v14, %v669_v14  ;;  %v1379_v18 = vpop.f32.mrb[7].mxu0 }
 0x18b   : > { %v936_v52 = vld [vmem:[#allocation4] sm:$0xf] }
 0x18c   : > { %676 = vst.msk [vmem:[#allocation2] sm:$0xf] %vm574_vm2, %v674_v17  ;;  %690 = vrot.lane.b32.xlu1 %v674_v17, %s1768_s24  ;;  %680 = vrot.lane.b32.xlu0 %v674_v17, %s1769_s12  ;;  %v944_v53 = vsel %vm707_vm3, %v936_v52, 0 }
 0x190   : > { %685 = vrot.lane.b32.xlu0 %v674_v17, %s1770_s26 }
 0x193   : > { %v695_v35 = vld [vmem:[#allocation2] sm:$0xf] }
 0x1b5   : > { %541 = vxpose.xlu1.b32.start.end [1/1] (short) (narrow) %v473_v20, 32 }
 0x1fe   : > { %v691_v22 = vpop.permute.xlu1 %690  ;;  %v681_v23 = vpop.permute.xlu0 %680 }
 0x1ff   : > { %694 = vst.msk [vmem:[#allocation2 + $0xc] sm:$0xf] %vm574_vm2, %v691_v22  ;;  %684 = vst.msk [vmem:[#allocation2 + $0x4] sm:$0xf] %vm574_vm2, %v681_v23 }
 0x202   : > { %v686_v24 = vpop.permute.xlu0 %685 }
 0x203   : > { %689 = vst.msk [vmem:[#allocation2 + $0x8] sm:$0xf] %vm574_vm2, %v686_v24 }
 0x206   : > { %v696_v38 = vld [vmem:[#allocation2 + $0x4] sm:$0xf]  ;;  %v698_v44 = vld [vmem:[#allocation2 + $0xc] sm:$0xf] }
 0x20a   : > { %v697_v41 = vld [vmem:[#allocation2 + $0x8] sm:$0xf] }
 0x235   : > { %v557_v25 = vpop.trf.xlu1 }
 0x236   : > { %v573_v26 = vpack.c.bf16 %v557_v25, %v557_v25 }
 0x238   : > { %575 = vst.msk [vmem:[#allocation3] sm:$0xf] %vm574_vm2, %v573_v26 }
 0x239   : > { %v558_v27 = vpop.trf.xlu1 }
 0x23a   : > { %v578_v28 = vpack.c.bf16 %v558_v27, %v558_v27 }
 0x23c   : > { %580 = vst.msk [vmem:[#allocation3 + $0x4] sm:$0xf] %vm574_vm2, %v578_v28 }
 0x23d   : > { %v559_v29 = vpop.trf.xlu1 }
 0x23e   : > { %v589_v30 = vpack.c.bf16 %v559_v29, %v559_v29 }
 0x23f   : > { %v699_v31 = vld [vmem:[#allocation3] sm:$0xf] }
 0x240   : > { %591 = vst.msk [vmem:[#allocation3 + $0x8] sm:$0xf] %vm574_vm2, %v589_v30  ;;  %v709_v32 = vsel %vm707_vm3, %v699_v31, 0 }
 0x241   : > { %1381 = vmatpush3.bf16.msra.mxu1 %v709_v32  ;;  %v560_v33 = vpop.trf.xlu1 }
 0x242   : > { %v597_v34 = vpack.c.bf16 %v560_v33, %v560_v33  ;;  %1392 = vmatprep.subr.bf16.mxu1 %v1766_v0 }
 0x243   : > { %v700_v36 = vld [vmem:[#allocation3 + $0x4] sm:$0xf] }
 0x244   : > { %599 = vst.msk [vmem:[#allocation3 + $0xc] sm:$0xf] %vm574_vm2, %v597_v34  ;;  %1383 = vmatmul.mubr.msk.bf16.vlgmr.msra.gmra.mrb[4].mxu1 %vm703_vm4, %v695_v35  ;;  %v755_v37 = vsel %vm707_vm3, %v700_v36, 0 }
 0x245   : > { %1387 = vmatpush3.bf16.msra.mxu0 %v755_v37  ;;  %1394 = vmatprep.mubr.msk.bf16.mxu1 %vm1767_vm0, %v1766_v0 }
 0x246   : > { %1398 = vmatprep.subr.bf16.mxu0 %v1766_v0 }
 0x247   : > { %v701_v39 = vld [vmem:[#allocation3 + $0x8] sm:$0xf] }
 0x248   : > { %1389 = vmatmul.mubr.msk.bf16.vlgmr.msra.gmra.mrb[8].mxu0 %vm703_vm4, %v696_v38  ;;  %v801_v40 = vsel %vm707_vm3, %v701_v39, 0 }
 0x249   : > { %1393 = vmatpush3.bf16.msra.mxu1 %v801_v40  ;;  %1400 = vmatprep.mubr.msk.bf16.mxu0 %vm1767_vm0, %v1766_v0 }
 0x24a   : > { %1404 = vmatprep.subr.bf16.mxu1 %v1766_v0 }
 0x24b   : > { %v702_v42 = vld [vmem:[#allocation3 + $0xc] sm:$0xf] }
 0x24c   : > { %1395 = vmatmul.mubr.msk.bf16.vlgmr.msra.gmra.mrb[8].mxu1 %vm703_vm4, %v697_v41  ;;  %v847_v43 = vsel %vm707_vm3, %v702_v42, 0 }
 0x24d   : > { %1399 = vmatpush3.bf16.msra.mxu0 %v847_v43  ;;  %1406 = vmatprep.mubr.msk.bf16.mxu1 %vm1767_vm0, %v1766_v0 }
 0x24e   : > { %1410 = vmatprep.subr.bf16.mxu0 %v1766_v0  ;;  %1405 = vmatpush3.bf16.msra.mxu1 %v944_v53 }
 0x24f   : > { %1416 = vmatprep.subr.bf16.mxu1 %v1766_v0 }
 0x250   : > { %1401 = vmatmul.mubr.msk.bf16.vlgmr.msra.gmra.mrb[12].mxu0 %vm703_vm4, %v698_v44 }
 0x251   : > { %1412 = vmatprep.mubr.msk.bf16.mxu0 %vm1767_vm0, %v1766_v0 }
 0x317   : > { %v745_v57 = vpop.f32.mrb[4].mxu1 }
 0x318   : > { %v892_v58 = vadd.f32 %v891_v56, %v745_v57  ;;  %v1384_v59 = vpop.f32.mrb[5].mxu1 }
 0x319   : > { %v748_v60 = vpop.f32.mrb[6].mxu1 }
 0x31a   : > { %v1385_v61 = vpop.f32.mrb[7].mxu1  ;;  %v896_v62 = vsel %vm703_vm4, %v892_v58, -inf }
 0x31b   : > { %897 = vmax.xlane.f32.xlu0 %v896_v62  ;;  %v791_v63 = vpop.f32.mrb[8].mxu0 }
 0x31c   : > { %v893_v1 = vadd.f32 %v891_v56, %v791_v63  ;;  %v1390_v2 = vpop.f32.mrb[9].mxu0 }
 0x31d   : > { %v794_v3 = vpop.f32.mrb[10].mxu0 }
 0x31e   : > { %v1391_v4 = vpop.f32.mrb[11].mxu0  ;;  %v899_v5 = vsel %vm703_vm4, %v893_v1, -inf }
 0x31f   : > { %v837_v6 = vpop.f32.mrb[8].mxu1  ;;  %900 = vmax.xlane.f32.xlu0 %v899_v5 }
 0x320   : > { %v894_v7 = vadd.f32 %v891_v56, %v837_v6  ;;  %v1396_v8 = vpop.f32.mrb[9].mxu1 }
 0x321   : > { %v840_v9 = vpop.f32.mrb[10].mxu1 }
 0x322   : > { %v1397_v10 = vpop.f32.mrb[11].mxu1  ;;  %v902_v11 = vsel %vm703_vm4, %v894_v7, -inf }
 0x323   : > { %903 = vmax.xlane.f32.xlu0 %v902_v11  ;;  %v883_v12 = vpop.f32.mrb[12].mxu0 }
 0x324   : > { %v895_v13 = vadd.f32 %v891_v56, %v883_v12  ;;  %v1402_v14 = vpop.f32.mrb[13].mxu0 }
 0x325   : > { %v886_v15 = vpop.f32.mrb[14].mxu0 }
 0x326   : > { %v1403_v16 = vpop.f32.mrb[15].mxu0  ;;  %v905_v17 = vsel %vm703_vm4, %v895_v13, -inf }
 0x327   : > { %906 = vmax.xlane.f32.xlu1 %v905_v17 }
 0x339   : > { %584 = vrot.lane.b32.xlu0 %v576_v50, %s1769_s12  ;;  %s2164_s12 = scalar_lea.hbm %s2222_s8, %s1326_s11 }
 0x33d   : > { %592 = vrot.lane.b32.xlu0 %v576_v50, %s1770_s26  ;;  %s1774_s26 = smov [#allocation13]  }
 0x33e   : > { %s1668_s17 = sshll.u32 %s1774_s26, 4  ;;  %s1669_s17 = int_to_ptr.vmem [resolvable:$false] %s1668_s17 }
 0x33f   : > { %s1670_s20 = scalar_lea.vmem %s1669_s17, 256  ;;  %p1671_p4 = scmp.lt.s32.totalorder %s2166_s19, %s1669_s17 }
 0x340   : > { %p1672_p9 = scmp.lt.s32.totalorder %s1670_s20, %s1664_s2 }
 0x341   : > { %600 = vrot.lane.b32.xlu0 %v576_v50, %s1768_s24 }
 0x342   : > { %p1673_p5 = por %p1672_p9, %p1671_p4 }
 0x344   : > { %p1674_p7 = pnand %p1673_p5, %p1667_p3 }
 0x3a8   : > { %v898_v18 = vpop.xlane.xlu0 %897 }
 0x3a9   : > { %v908_v19 = vsub.f32 %v892_v58, %v898_v18 }
 0x3ab   : > { %v912_v20 = vmul.f32 1.442695, %v908_v19 }
 0x3ac   : > { %v901_v21 = vpop.xlane.xlu0 %900 }
 0x3ad   : > { %1532 = vpow2.f32 %v912_v20  ;;  %v909_v22 = vsub.f32 %v893_v1, %v901_v21 }
 0x3af   : > { %v914_v23 = vmul.f32 1.442695, %v909_v22 }
 0x3b0   : > { %v904_v24 = vpop.xlane.xlu0 %903 }
 0x3b1   : > { %1534 = vpow2.f32 %v914_v23  ;;  %v910_v25 = vsub.f32 %v894_v7, %v904_v24 }
 0x3b3   : > { %v916_v26 = vmul.f32 1.442695, %v910_v25 }
 0x3b4   : > { %v585_v27 = vpop.permute.xlu0 %584  ;;  %v907_v28 = vpop.xlane.xlu1 %906 }
 0x3b5   : > { %1536 = vpow2.f32 %v916_v26  ;;  %588 = vst.msk [vmem:[#allocation4 + $0x4] sm:$0xf] %vm574_vm2, %v585_v27  ;;  %v911_v29 = vsub.f32 %v895_v13, %v907_v28 }
 0x3b7   : > { %v1533_v30 = vpop.eup %1532  ;;  %v918_v31 = vmul.f32 1.442695, %v911_v29 }
 0x3b8   : > { %v593_v32 = vpop.permute.xlu0 %592  ;;  %v932_v33 = vpack.c.bf16 %v1533_v30, %v1533_v30  ;;  %v920_v50 = vsel %vm703_vm4, %v1533_v30, 0.0 }
 0x3b9   : > { %1538 = vpow2.f32 %v918_v31  ;;  %596 = vst.msk [vmem:[#allocation4 + $0x8] sm:$0xf] %vm574_vm2, %v593_v32 }
 0x3ba   : > { %1407 = vmatmul.mubr.msk.bf16.vlgmr.msra.gmra.mrb[12].mxu1 %vm703_vm4, %v932_v33 }
 0x3bb   : > { %v1535_v34 = vpop.eup %1534  ;;  %1418 = vmatprep.mubr.msk.bf16.mxu1 %vm1767_vm0, %v1766_v0 }
 0x3bc   : > { %v601_v35 = vpop.permute.xlu0 %600  ;;  %v923_v36 = vsel %vm703_vm4, %v1535_v34, 0.0  ;;  %v937_v37 = vld [vmem:[#allocation4 + $0x4] sm:$0xf]  ;;  %v933_v40 = vpack.c.bf16 %v1535_v34, %v1535_v34 }
 0x3bd   : > { %604 = vst.msk [vmem:[#allocation4 + $0xc] sm:$0xf] %vm574_vm2, %v601_v35  ;;  %924 = vadd.xlane.f32.xlu0 %v923_v36  ;;  %v990_v38 = vsel %vm707_vm3, %v937_v37, 0 }
 0x3be   : > { %1411 = vmatpush3.bf16.msra.mxu0 %v990_v38 }
 0x3bf   : > { %v1537_v39 = vpop.eup %1536  ;;  %1422 = vmatprep.subr.bf16.mxu0 %v1766_v0 }
 0x3c0   : > { %v926_v41 = vsel %vm703_vm4, %v1537_v39, 0.0  ;;  %v938_v42 = vld [vmem:[#allocation4 + $0x8] sm:$0xf]  ;;  %v934_v45 = vpack.c.bf16 %v1537_v39, %v1537_v39 }
 0x3c1   : > { %1413 = vmatmul.mubr.msk.bf16.vlgmr.msra.gmra.mrb[16].mxu0 %vm703_vm4, %v933_v40  ;;  %927 = vadd.xlane.f32.xlu1 %v926_v41  ;;  %v1036_v43 = vsel %vm707_vm3, %v938_v42, 0 }
 0x3c2   : > { %1417 = vmatpush3.bf16.msra.mxu1 %v1036_v43  ;;  %1424 = vmatprep.mubr.msk.bf16.mxu0 %vm1767_vm0, %v1766_v0 }
 0x3c3   : > { %v1539_v44 = vpop.eup %1538 }
 0x3c4   : > { %v929_v46 = vsel %vm703_vm4, %v1539_v44, 0.0  ;;  %v939_v47 = vld [vmem:[#allocation4 + $0xc] sm:$0xf]  ;;  %v935_v49 = vpack.c.bf16 %v1539_v44, %v1539_v44 }
 0x3c5   : > { %1419 = vmatmul.mubr.msk.bf16.vlgmr.msra.gmra.mrb[16].mxu1 %vm703_vm4, %v934_v45  ;;  %930 = vadd.xlane.f32.xlu1 %v929_v46  ;;  %v1082_v48 = vsel %vm707_vm3, %v939_v47, 0 }
 0x3c6   : > { %1423 = vmatpush3.bf16.msra.mxu0 %v1082_v48 }
 0x3c9   : > { %1425 = vmatmul.mubr.msk.bf16.vlgmr.msra.gmra.mrb[20].mxu0 %vm703_vm4, %v935_v49  ;;  %921 = vadd.xlane.f32.xlu1 %v920_v50 }
 0x44a   : > { %v925_v51 = vpop.xlane.xlu0 %924 }
 0x44b   : > { %1540 = vrcp.f32 %v925_v51 }
 0x44e   : > { %v928_v52 = vpop.xlane.xlu1 %927 }
 0x44f   : > { %1542 = vrcp.f32 %v928_v52 }
 0x452   : > { %v931_v54 = vpop.xlane.xlu1 %930 }
 0x453   : > { %1544 = vrcp.f32 %v931_v54 }
 0x455   : > { %v1541_v57 = vpop.eup %1540 }
 0x456   : > { %v922_v12 = vpop.xlane.xlu1 %921 }
 0x457   : > { %1546 = vrcp.f32 %v922_v12 }
 0x459   : > { %v1543_v63 = vpop.eup %1542 }
 0x45d   : > { %v1545_v6 = vpop.eup %1544 }
 0x461   : > { %v1547_v13 = vpop.eup %1546 }
 0x48d   : > { %v980_v0 = vpop.f32.mrb[12].mxu1 }
 0x48e   : > { %v1408_v53 = vpop.f32.mrb[13].mxu1  ;;  %v1128_v16 = vmul.f32 %v1547_v13, %v980_v0 }
 0x48f   : > { %v983_v55 = vpop.f32.mrb[14].mxu1 }
 0x490   : > { %v1409_v56 = vpop.f32.mrb[15].mxu1 }
 0x494   : > { %v1026_v58 = vpop.f32.mrb[16].mxu0 }
 0x495   : > { %v1129_v59 = vmul.f32 %v1541_v57, %v1026_v58  ;;  %v1414_v60 = vpop.f32.mrb[17].mxu0 }
 0x496   : > { %v1029_v61 = vpop.f32.mrb[18].mxu0 }
 0x497   : > { %1133 = vrot.lane.b32.xlu0 %v1129_v59, %s1771_s4  ;;  %v1415_v62 = vpop.f32.mrb[19].mxu0 }
 0x498   : > { %v1072_v1 = vpop.f32.mrb[16].mxu1 }
 0x499   : > { %v1130_v2 = vmul.f32 %v1543_v63, %v1072_v1  ;;  %v1420_v3 = vpop.f32.mrb[17].mxu1 }
 0x49a   : > { %v1075_v4 = vpop.f32.mrb[18].mxu1 }
 0x49b   : > { %v1421_v5 = vpop.f32.mrb[19].mxu1  ;;  %1137 = vrot.lane.b32.xlu1 %v1130_v2, %s1772_s15 }
 0x49c   : > { %v1118_v7 = vpop.f32.mrb[20].mxu0 }
 0x49d   : > { %v1131_v8 = vmul.f32 %v1545_v6, %v1118_v7  ;;  %v1426_v9 = vpop.f32.mrb[21].mxu0 }
 0x49e   : > { %v1121_v10 = vpop.f32.mrb[22].mxu0 }
 0x49f   : > { %1141 = vrot.lane.b32.xlu1 %v1131_v8, %s1773_s14  ;;  %v1427_v11 = vpop.f32.mrb[23].mxu0 }
 0x509   : > { %v1134_v14 = vpop.permute.xlu0 %1133 }
 0x50a   : > { %v1144_v17 = vsel %vm703_vm4, %v1128_v16, %v1134_v14 }
 0x50d   : > { %v1138_v15 = vpop.permute.xlu1 %1137 }
 0x50e   : > { %v1146_v18 = vsel %vm1145_vm5, %v1144_v17, %v1138_v15 }
 0x511   : > { %v1142_v19 = vpop.permute.xlu1 %1141 }
 0x512   : > { %v1148_v20 = vsel %vm1147_vm6, %v1146_v18, %v1142_v19 }
 0x513   : > { %1149 = vst.msk [vmem:[%s403_s13] sm:$0xff] %vm434_vm1, %v1148_v20 }
 0x514   : > { %1677 = shalt.err (!%p1674_p7)
}
 0x515   : > { %s1678_s22 = scalar_lea.hbm %s2164_s12, 128  ;;  %s1682_s16 = scalar_lea.hbm %s2222_s8, 256 }
 0x516   : > { %p1679_p13 = scmp.ne.s32.totalorder %s2164_s12, %s1678_s22  ;;  %p1683_p2 = scmp.lt.u32.totalorder %s2164_s12, %s2222_s8 }
 0x517   : > { %p1684_p11 = scmp.lt.u32.totalorder %s1682_s16, %s1678_s22  ;;  %p1686_p1 = scmp.lt.u32.totalorder %s1678_s22, %s2164_s12 }
 0x518   : > { %p1680_p8 = pnand %p1679_p13, %p2253_p6 }
 0x519   : > { %p1685_p0 = por %p1684_p11, %p1683_p2 }
 0x51a   : > { %p1681_p12 = pneg %p1680_p8 }
 0x51b   : > { %p1687_p10 = por %p1686_p1, %p1685_p0 }
 0x51d   : > { %p1688_p3 = pnand %p1687_p10, %p1681_p12 }
 0x51f   : > { %1691 = shalt.err (!%p1688_p3)
}
 0x520   : > { %1440 = dma.vmem_to_hbm [thread:$0]  (%p2253_p6), %s2166_s19, 128, %s2164_s12, %s1151_s30  }
 0x521 PF: > { %s2254_s15 = sld [smem:[#allocation19_spill]]  ;;  %s2255_s14 = sld [smem:[#allocation20_spill]] }
 0x522   : > { %p2257_p9 = scmp.ge.s32.totalorder %s1758_s10, 2 }
 0x527   : > { %s1177_s11 = sand.u32 1, %s2254_s15   ;;  %p2256_p4 = scmp.ne.s32.totalorder %s2255_s14, 0 }
 0x528   : > { %s1178_s13 = scalar_lea.sflag [#allocation7], %s1177_s11 }
 0x529   : > { %p1457_p5 = pnand %p2257_p9, %p2256_p4 }
 0x52b   : > { %1733 = dma.done.wait (!%p1457_p5), %s1178_s13, 128  }
 0x52c   : > { %1735 = vsyncadd (!%p1457_p5), %s1178_s13, 4294967168  ;;  %s28_s10 = sadd.s32 1, %s1758_s10   ;;  %s2258_s18 = sld [smem:[#allocation21_spill]] }
 0x52d   : > { %p25_p7 = scmp.ge.s32.totalorder %s28_s10, 4   ;;  %s2259_s27 = smov %s1742_s28 }
 0x52e   : > { %s2260_s28 = smov %s1746_s29  ;;  %s2261_s29 = smov %s1961_s21 }
 0x52f   : > { %s2262_s30 = smov %s1754_s9  ;;  %27 = sbr.rel (!%p25_p7) target bundleno = 13 (0xd), region = 131 }
 0x532   : > { %s2263_s9 = smov %s2258_s18 }
 0x536   :  { %1183 = vsyncpa [#allocation6], 1 }
 0x537   :  { %1185 = vsyncpa [#allocation6 + $0x1], 1 }
 0x538   :  { %1186 = vsyncpa [#allocation9], 1 }
 0x539   :  { %1188 = vsyncpa [#allocation9 + $0x1], 1 }
 0x53a   :  { %1189 = vsyncpa [#allocation12], 1 }
 0x53b   :  { %1190 = vsyncpa [#allocation7], 1 }
 0x53c   :  { %1192 = vsyncpa [#allocation7 + $0x1], 1 }

</bundles_post_ra>
